<compile_context>
chip_gen: v6e
topology: v6e:2x2x1
jax: 0.10.0
libtpu: 0.0.40
codegen_flags: <defaults>
</compile_context>

<pallas_src>
import functools

import jax
import jax.numpy as jnp
from jax.experimental import pallas as pl
from jax.experimental.pallas import tpu as pltpu


def _hm_lstm_cell_kernel(H, B, T, a, include_topdown,
                         w_ref, s_ref, out_ref, x_scr):
    """Single-block kernel. All refs are (batch, feature)-layout VMEM tiles.

    s_ref columns: [0:B) h_bottom | [B:B+T) h_top | h (H) | c (H) | z (1) | zb (1)
    w_ref        : (K+1, 4H+1) = [W_01^T ; U_21^T ; U_11^T ; bias-row]
    x_scr        : (N, K+1) fused matmul LHS [h_bottom | z*h_top | zb*h | 1]
    out_ref      : (N, 2H+1) packed [h_new | c_new | z_new]
    """
    N = s_ref.shape[0]
    K = B + T + H
    ht_off = B
    h_off = B + T
    c_off = B + T + H
    z_off = c_off + H
    zb_off = z_off + 1

    z = s_ref[:, z_off:z_off + 1]       # (N, 1) per-sample gate
    zb = s_ref[:, zb_off:zb_off + 1]    # (N, 1)
    c = s_ref[:, c_off:c_off + H]
    h = s_ref[:, h_off:h_off + H]

    # Fused matmul LHS. z/zb scaling commutes with the matmul because they are
    # per-row scalars. The trailing constant-1 column picks up the bias row.
    x_scr[:, 0:B] = s_ref[:, 0:B]
    if include_topdown:
        x_scr[:, ht_off:ht_off + T] = s_ref[:, ht_off:ht_off + T] * z
    x_scr[:, h_off:h_off + H] = h * zb
    x_scr[:, K:K + 1] = jnp.ones((N, 1), jnp.float32)

    # Single MXU matmul (cast LHS to the weight dtype: f32 or bf16), f32 accum.
    f_s = jnp.dot(x_scr[...].astype(w_ref.dtype), w_ref[...],
                  preferred_element_type=jnp.float32)   # (N, 4H+1)

    # One sigmoid + one tanh over the whole 4H-lane gate slab, lane-mask blend.
    gates_pre = f_s[:, 0:4 * H]                         # (N, 4H) == one vreg @H=32
    lane = jax.lax.broadcasted_iota(jnp.int32, (N, 4 * H), 1)
    act = jnp.where(lane < 3 * H,
                    jax.nn.sigmoid(gates_pre),
                    jnp.tanh(gates_pre))
    f = act[:, 0:H]
    i = act[:, H:2 * H]
    o = act[:, 2 * H:3 * H]
    g = act[:, 3 * H:4 * H]
    z_pre = f_s[:, 4 * H:4 * H + 1]                     # (N, 1)

    one = jnp.float32(1.0)
    ig = i * g
    omz = one - z
    omzb = one - zb
    w_copy = omz * omzb      # (1-z)(1-z_bottom): carry previous state
    w_update = omz * zb      # (1-z) z_bottom   : standard LSTM update path

    c_new = z * ig + w_copy * c + w_update * (f * c + ig)
    o_tanh_c = o * jnp.tanh(c_new)
    h_new = z * o_tanh_c + w_copy * h + w_update * o_tanh_c

    # bound(hard_sigm(a, x)): for static a > 0, clip((a*x+1)/2,0,1) > 0.5 <=> x > 0.
    if a > 0:
        z_new = (z_pre > 0.0).astype(jnp.float32)
    else:
        z_hat = jnp.clip((z_pre * a + 1.0) * 0.5, 0.0, 1.0)
        z_new = (z_hat > 0.5).astype(jnp.float32)

    out_ref[:, 0:H] = h_new
    out_ref[:, H:2 * H] = c_new
    out_ref[:, 2 * H:2 * H + 1] = z_new


def fuse_hm_lstm_weights(W_01, U_21, U_11, bias, *, last_layer=False,
                         dtype=jnp.float32):
    """One-time weight fusion (do NOT call per timestep).

    Returns W_aug of shape (K+1, 4H+1) with K = bottom (+ top) + hidden; the
    final row is the bias (paired with a constant-1 column in the kernel's LHS).
    Use dtype=jnp.bfloat16 on v6e/v7x to halve the weight DMA and MXU passes
    (re-validate numerics against your tolerance).
    """
    parts = [W_01.T]
    if not last_layer:
        parts.append(U_21.T)
    parts.append(U_11.T)
    parts.append(bias[None, :])
    return jnp.concatenate([p.astype(jnp.float32) for p in parts],
                           axis=0).astype(dtype)


@functools.partial(jax.jit, static_argnames=("hidden_size", "a", "last_layer"))
def hm_lstm_cell(W_aug, c, h_bottom, h, h_top, z, z_bottom, *,
                 hidden_size, a, last_layer=False):
    """Pallas implementation of HM_LSTMCell.forward.

    Inputs/outputs follow the PyTorch module's (feature, batch) convention;
    internally everything runs in (batch, feature) layout so the feature axis
    maps to TPU lanes. Returns (h_new, c_new, z_new) with shapes
    (H, N), (H, N), (1, N).
    """
    H = hidden_size
    N = c.shape[1]
    B = h_bottom.shape[0]
    T = 0 if last_layer else h_top.shape[0]
    K = B + T + H
    f32 = jnp.float32

    # Single state slab -> one input DMA descriptor instead of six.
    parts = [h_bottom.T]
    if not last_layer:
        parts.append(h_top.T)
    parts += [h.T, c.T, z.T, z_bottom.T]
    state = jnp.concatenate([p.astype(f32) for p in parts], axis=1)  # (N, K+H+2)

    kernel = functools.partial(_hm_lstm_cell_kernel, H, B, T, float(a),
                               not last_layer)
    vmem = pl.BlockSpec(memory_space=pltpu.MemorySpace.VMEM)

    flops = 2 * N * (K + 1) * (4 * H + 1)
    transcendentals = N * (4 * H + 4 * H + H)   # sigmoid + tanh on 4H, tanh on H
    bytes_accessed = (W_aug.size * W_aug.dtype.itemsize
                      + state.size * 4
                      + N * (2 * H + 1) * 4)

    out = pl.pallas_call(
        kernel,
        out_shape=jax.ShapeDtypeStruct((N, 2 * H + 1), f32),
        in_specs=[vmem, vmem],
        out_specs=vmem,
        scratch_shapes=[pltpu.VMEM((N, K + 1), f32)],
        cost_estimate=pl.CostEstimate(flops=flops,
                                      transcendentals=transcendentals,
                                      bytes_accessed=bytes_accessed),
    )(W_aug, state)

    h_new = out[:, 0:H].T
    c_new = out[:, H:2 * H].T
    z_new = out[:, 2 * H:2 * H + 1].T
    return h_new, c_new, z_new


def _reference(W_01, U_21, U_11, bias, c, h_bottom, h, h_top, z, z_bottom,
               hidden_size, a, last_layer=False):
    """Pure-JAX reference mirroring the PyTorch forward, for verification."""
    H = hidden_size
    hi = jax.lax.Precision.HIGHEST
    s_recur = jnp.dot(W_01, h_bottom, precision=hi)
    if last_layer:
        s_topdown = jnp.zeros_like(s_recur)
    else:
        s_topdown = z * jnp.dot(U_21, h_top, precision=hi)
    s_bottomup = z_bottom * jnp.dot(U_11, h, precision=hi)
    f_s = s_recur + s_topdown + s_bottomup + bias[:, None]
    f = jax.nn.sigmoid(f_s[0:H])
    i = jax.nn.sigmoid(f_s[H:2 * H])
    o = jax.nn.sigmoid(f_s[2 * H:3 * H])
    g = jnp.tanh(f_s[3 * H:4 * H])
    z_hat = jnp.clip((f_s[4 * H:4 * H + 1] * a + 1.0) / 2.0, 0.0, 1.0)
    c_new = z * (i * g) + (1 - z) * (1 - z_bottom) * c \
        + (1 - z) * z_bottom * (f * c + i * g)
    h_new = z * o * jnp.tanh(c_new) + (1 - z) * (1 - z_bottom) * h \
        + (1 - z) * z_bottom * o * jnp.tanh(c_new)
    z_new = (z_hat > 0.5).astype(jnp.float32)
    return h_new, c_new, z_new


if __name__ == "__main__":
    # Small sizes consistent with the module: hidden=32, bottom=32, top=32, batch=8.
    hidden_size = 32
    bottom_size = 32
    top_size = 32
    batch = 8
    a = 1.0
    H4 = 4 * hidden_size + 1

    key = jax.random.PRNGKey(0)
    keys = jax.random.split(key, 10)
    stdv = 1.0 / (hidden_size ** 0.5)

    # Parameters (uniform(-stdv, stdv), matching reset_parameters()).
    W_01 = jax.random.uniform(keys[0], (H4, bottom_size), jnp.float32, -stdv, stdv)
    U_21 = jax.random.uniform(keys[1], (H4, top_size), jnp.float32, -stdv, stdv)
    U_11 = jax.random.uniform(keys[2], (H4, hidden_size), jnp.float32, -stdv, stdv)
    bias = jax.random.uniform(keys[3], (H4,), jnp.float32, -stdv, stdv)

    # States in the module's (feature, batch) layout.
    c = jax.random.normal(keys[4], (hidden_size, batch), jnp.float32)
    h_bottom = jax.random.normal(keys[5], (bottom_size, batch), jnp.float32)
    h = jax.random.normal(keys[6], (hidden_size, batch), jnp.float32)
    h_top = jax.random.normal(keys[7], (top_size, batch), jnp.float32)
    z = (jax.random.uniform(keys[8], (1, batch)) > 0.5).astype(jnp.float32)
    z_bottom = (jax.random.uniform(keys[9], (1, batch)) > 0.5).astype(jnp.float32)

    # One-time weight fusion (hoisted out of the per-step call).
    W_aug = fuse_hm_lstm_weights(W_01, U_21, U_11, bias, last_layer=False)
    W_aug_last = fuse_hm_lstm_weights(W_01, None, U_11, bias, last_layer=True)

    # --- non-last-layer variant (f32 MXU) ---
    h_new, c_new, z_new = hm_lstm_cell(
        W_aug, c, h_bottom, h, h_top, z, z_bottom,
        hidden_size=hidden_size, a=a, last_layer=False)
    jax.block_until_ready((h_new, c_new, z_new))

    h_ref, c_ref, z_ref = _reference(
        W_01, U_21, U_11, bias, c, h_bottom, h, h_top, z, z_bottom,
        hidden_size, a, last_layer=False)
    assert jnp.allclose(h_new, h_ref, atol=1e-4, rtol=1e-4)
    assert jnp.allclose(c_new, c_ref, atol=1e-4, rtol=1e-4)
    assert jnp.array_equal(z_new, z_ref)

    # --- last-layer (specialized, top-down term skipped) variant ---
    h_new2, c_new2, z_new2 = hm_lstm_cell(
        W_aug_last, c, h_bottom, h, h_top, z, z_bottom,
        hidden_size=hidden_size, a=a, last_layer=True)
    jax.block_until_ready((h_new2, c_new2, z_new2))

    h_ref2, c_ref2, z_ref2 = _reference(
        W_01, U_21, U_11, bias, c, h_bottom, h, h_top, z, z_bottom,
        hidden_size, a, last_layer=True)
    assert jnp.allclose(h_new2, h_ref2, atol=1e-4, rtol=1e-4)
    assert jnp.allclose(c_new2, c_ref2, atol=1e-4, rtol=1e-4)
    assert jnp.array_equal(z_new2, z_ref2)

    # --- bf16 MXU-operand variant (v6e/v7x optimization; loose tolerance) ---
    W_aug_bf16 = fuse_hm_lstm_weights(W_01, U_21, U_11, bias, last_layer=False,
                                      dtype=jnp.bfloat16)
    h_b, c_b, _ = hm_lstm_cell(
        W_aug_bf16, c, h_bottom, h, h_top, z, z_bottom,
        hidden_size=hidden_size, a=a, last_layer=False)
    jax.block_until_ready((h_b, c_b))
    assert jnp.allclose(h_b, h_ref, atol=5e-2, rtol=5e-2)
    assert jnp.allclose(c_b, c_ref, atol=5e-2, rtol=5e-2)

    print("KERNEL_OK")
</pallas_src>

<mosaic_0001>
module attributes {stable_mosaic.version = 11 : i64} {
  func.func @_hm_lstm_cell_kernel(%arg0: memref<97x129xf32, #tpu.memory_space<vmem>>, %arg1: memref<8x130xf32, #tpu.memory_space<vmem>>, %arg2: memref<8x65xf32, #tpu.memory_space<vmem>>, %arg3: memref<8x97xf32, #tpu.memory_space<vmem>>) attributes {dimension_semantics = [], scalar_prefetch = 0 : i64, scratch_operands = 1 : i64, tpu.core_type = #tpu.core_type<tc>} {
    %c0 = arith.constant 0 : index
    %c128 = arith.constant 128 : index
    %0 = vector.load %arg1[%c0, %c128] : memref<8x130xf32, #tpu.memory_space<vmem>>, vector<8x1xf32>
    %c0_0 = arith.constant 0 : index
    %c129 = arith.constant 129 : index
    %1 = vector.load %arg1[%c0_0, %c129] : memref<8x130xf32, #tpu.memory_space<vmem>>, vector<8x1xf32>
    %c0_1 = arith.constant 0 : index
    %c96 = arith.constant 96 : index
    %2 = vector.load %arg1[%c0_1, %c96] : memref<8x130xf32, #tpu.memory_space<vmem>>, vector<8x32xf32>
    %c0_2 = arith.constant 0 : index
    %c64 = arith.constant 64 : index
    %3 = vector.load %arg1[%c0_2, %c64] : memref<8x130xf32, #tpu.memory_space<vmem>>, vector<8x32xf32>
    %c0_3 = arith.constant 0 : index
    %c0_4 = arith.constant 0 : index
    %4 = vector.load %arg1[%c0_3, %c0_4] : memref<8x130xf32, #tpu.memory_space<vmem>>, vector<8x32xf32>
    %c0_5 = arith.constant 0 : index
    %c0_6 = arith.constant 0 : index
    %5 = vector.load %arg3[%c0_5, %c0_6] : memref<8x97xf32, #tpu.memory_space<vmem>>, vector<8x32xf32>
    tpu.vector_store %arg3[%c0_5, %c0_6], %4 {strides = array<i32>} : memref<8x97xf32, #tpu.memory_space<vmem>>, vector<8x32xf32>,
    %c0_7 = arith.constant 0 : index
    %c32 = arith.constant 32 : index
    %6 = vector.load %arg1[%c0_7, %c32] : memref<8x130xf32, #tpu.memory_space<vmem>>, vector<8x32xf32>
    %7 = vector.broadcast %0 : vector<8x1xf32> to vector<8x32xf32>
    %8 = arith.mulf %6, %7 : vector<8x32xf32>
    %c0_8 = arith.constant 0 : index
    %c32_9 = arith.constant 32 : index
    %9 = vector.load %arg3[%c0_8, %c32_9] : memref<8x97xf32, #tpu.memory_space<vmem>>, vector<8x32xf32>
    tpu.vector_store %arg3[%c0_8, %c32_9], %8 {strides = array<i32>} : memref<8x97xf32, #tpu.memory_space<vmem>>, vector<8x32xf32>,
    %10 = vector.broadcast %1 : vector<8x1xf32> to vector<8x32xf32>
    %11 = arith.mulf %3, %10 : vector<8x32xf32>
    %c0_10 = arith.constant 0 : index
    %c64_11 = arith.constant 64 : index
    %12 = vector.load %arg3[%c0_10, %c64_11] : memref<8x97xf32, #tpu.memory_space<vmem>>, vector<8x32xf32>
    tpu.vector_store %arg3[%c0_10, %c64_11], %11 {strides = array<i32>} : memref<8x97xf32, #tpu.memory_space<vmem>>, vector<8x32xf32>,
    %cst = arith.constant 1.000000e+00 : f32
    %13 = vector.broadcast %cst : f32 to vector<8x1xf32>
    %c0_12 = arith.constant 0 : index
    %c96_13 = arith.constant 96 : index
    %14 = vector.load %arg3[%c0_12, %c96_13] : memref<8x97xf32, #tpu.memory_space<vmem>>, vector<8x1xf32>
    tpu.vector_store %arg3[%c0_12, %c96_13], %13 {strides = array<i32>} : memref<8x97xf32, #tpu.memory_space<vmem>>, vector<8x1xf32>,
    %c0_14 = arith.constant 0 : index
    %c0_15 = arith.constant 0 : index
    %15 = vector.load %arg3[%c0_14, %c0_15] : memref<8x97xf32, #tpu.memory_space<vmem>>, vector<8x97xf32>
    %c0_16 = arith.constant 0 : index
    %c0_17 = arith.constant 0 : index
    %16 = vector.load %arg0[%c0_16, %c0_17] : memref<97x129xf32, #tpu.memory_space<vmem>>, vector<97x129xf32>
    %cst_18 = arith.constant dense<0.000000e+00> : vector<8x129xf32>
    %17 = tpu.matmul %15, %16, %cst_18 {dimension_numbers = #tpu.dot_dimension_numbers<[1], [0], [0], [1], [0, 0, 1, 1], [], []>} : vector<8x97xf32>, vector<97x129xf32>, vector<8x129xf32> -> vector<8x129xf32>
    %18 = vector.extract_strided_slice %17 {offsets = [0, 0], sizes = [8, 128], strides = [1, 1]} : vector<8x129xf32> to vector<8x128xf32>
    %19 = tpu.iota {dimensions = array<i32: 1>} : vector<8x128xi32>
    %c96_i32 = arith.constant 96 : i32
    %20 = vector.broadcast %c96_i32 : i32 to vector<8x128xi32>
    %21 = arith.cmpi slt, %19, %20 : vector<8x128xi32>
    %22 = arith.negf %18 : vector<8x128xf32>
    %23 = math.exp %22 : vector<8x128xf32>
    %cst_19 = arith.constant 1.000000e+00 : f32
    %24 = vector.broadcast %cst_19 : f32 to vector<8x128xf32>
    %25 = arith.addf %24, %23 : vector<8x128xf32>
    %26 = arith.divf %24, %25 : vector<8x128xf32>
    %27 = math.tanh %18 : vector<8x128xf32>
    %28 = arith.select %21, %26, %27 : vector<8x128xi1>, vector<8x128xf32>
    %29 = vector.extract_strided_slice %28 {offsets = [0, 0], sizes = [8, 32], strides = [1, 1]} : vector<8x128xf32> to vector<8x32xf32>
    %30 = vector.extract_strided_slice %28 {offsets = [0, 32], sizes = [8, 32], strides = [1, 1]} : vector<8x128xf32> to vector<8x32xf32>
    %31 = vector.extract_strided_slice %28 {offsets = [0, 64], sizes = [8, 32], strides = [1, 1]} : vector<8x128xf32> to vector<8x32xf32>
    %32 = vector.extract_strided_slice %28 {offsets = [0, 96], sizes = [8, 32], strides = [1, 1]} : vector<8x128xf32> to vector<8x32xf32>
    %33 = vector.extract_strided_slice %17 {offsets = [0, 128], sizes = [8, 1], strides = [1, 1]} : vector<8x129xf32> to vector<8x1xf32>
    %34 = arith.mulf %30, %32 : vector<8x32xf32>
    %cst_20 = arith.constant 1.000000e+00 : f32
    %35 = vector.broadcast %cst_20 : f32 to vector<8x1xf32>
    %36 = arith.subf %35, %0 : vector<8x1xf32>
    %cst_21 = arith.constant 1.000000e+00 : f32
    %37 = vector.broadcast %cst_21 : f32 to vector<8x1xf32>
    %38 = arith.subf %37, %1 : vector<8x1xf32>
    %39 = arith.mulf %36, %38 : vector<8x1xf32>
    %40 = arith.mulf %36, %1 : vector<8x1xf32>
    %41 = vector.broadcast %0 : vector<8x1xf32> to vector<8x32xf32>
    %42 = arith.mulf %41, %34 : vector<8x32xf32>
    %43 = vector.broadcast %39 : vector<8x1xf32> to vector<8x32xf32>
    %44 = arith.mulf %43, %2 : vector<8x32xf32>
    %45 = arith.addf %42, %44 : vector<8x32xf32>
    %46 = arith.mulf %29, %2 : vector<8x32xf32>
    %47 = arith.addf %46, %34 : vector<8x32xf32>
    %48 = vector.broadcast %40 : vector<8x1xf32> to vector<8x32xf32>
    %49 = arith.mulf %48, %47 : vector<8x32xf32>
    %50 = arith.addf %45, %49 : vector<8x32xf32>
    %51 = math.tanh %50 : vector<8x32xf32>
    %52 = arith.mulf %31, %51 : vector<8x32xf32>
    %53 = vector.broadcast %0 : vector<8x1xf32> to vector<8x32xf32>
    %54 = arith.mulf %53, %52 : vector<8x32xf32>
    %55 = vector.broadcast %39 : vector<8x1xf32> to vector<8x32xf32>
    %56 = arith.mulf %55, %3 : vector<8x32xf32>
    %57 = arith.addf %54, %56 : vector<8x32xf32>
    %58 = vector.broadcast %40 : vector<8x1xf32> to vector<8x32xf32>
    %59 = arith.mulf %58, %52 : vector<8x32xf32>
    %60 = arith.addf %57, %59 : vector<8x32xf32>
    %cst_22 = arith.constant 0.000000e+00 : f32
    %61 = vector.broadcast %cst_22 : f32 to vector<8x1xf32>
    %62 = arith.cmpf ogt, %33, %61 : vector<8x1xf32>
    %63 = arith.extui %62 : vector<8x1xi1> to vector<8x1xi32>
    %64 = arith.sitofp %63 : vector<8x1xi32> to vector<8x1xf32>
    %c0_23 = arith.constant 0 : index
    %c0_24 = arith.constant 0 : index
    %65 = vector.load %arg2[%c0_23, %c0_24] : memref<8x65xf32, #tpu.memory_space<vmem>>, vector<8x32xf32>
    tpu.vector_store %arg2[%c0_23, %c0_24], %60 {strides = array<i32>} : memref<8x65xf32, #tpu.memory_space<vmem>>, vector<8x32xf32>,
    %c0_25 = arith.constant 0 : index
    %c32_26 = arith.constant 32 : index
    %66 = vector.load %arg2[%c0_25, %c32_26] : memref<8x65xf32, #tpu.memory_space<vmem>>, vector<8x32xf32>
    tpu.vector_store %arg2[%c0_25, %c32_26], %50 {strides = array<i32>} : memref<8x65xf32, #tpu.memory_space<vmem>>, vector<8x32xf32>,
    %c0_27 = arith.constant 0 : index
    %c64_28 = arith.constant 64 : index
    %67 = vector.load %arg2[%c0_27, %c64_28] : memref<8x65xf32, #tpu.memory_space<vmem>>, vector<8x1xf32>
    tpu.vector_store %arg2[%c0_27, %c64_28], %64 {strides = array<i32>} : memref<8x65xf32, #tpu.memory_space<vmem>>, vector<8x1xf32>,
    return
  }
}

</mosaic_0001>

<bundles_post_ra>
// kernel: hm_lstm_cell.1
= control target key start
LH: loop header
LB: loop body
LE: loop exit
PB: predicated region body
PF: predicated region fallthrough
CT: control target
= control target key end

     0   :  { %vm64_vm0 = vcmask 1040384   ;;  %v255_v0 = vmov 0   ;;  %vm13_vm1 = vcmask 261120   ;;  %v256_v10 = vmov 1   ;;  %s258_s20 = smov 127   ;;  %s261_s8 = smov 32   ;;  %s393_s1 = inlined_call_operand.vmem [shape: f32[8,130], index: 1, kind: input, shape index: {}]   ;;  %s394_s0 = inlined_call_operand.vmem [shape: f32[97,129], index: 0, kind: input, shape index: {}]   ;;  %s395_s2 = inlined_call_operand.vmem [shape: f32[8,65], index: 2, kind: output, shape index: {}]  }
   0x1   :  { %243 = vset.pattern.permute.xlu0 %v255_v0  ;;  %v11_v1 = vld [vmem:[%s393_s1 + $0x8] sm:$0xff]  ;;  %v58_v3 = vld [vmem:[%s394_s0 + $0xc0] sm:$0x1]  ;;  %246 = vset.pattern.permute.xlu1 %v255_v0  ;;  %v57_v4 = vld [vmem:[%s394_s0 + $0xb8] sm:$0xff]  ;;  %v257_v14 = vmov 0.0   ;;  %vm22_vm2 = vcmask 523520   ;;  %v142_v44 = vlaneseq }
   0x2   :  { %v59_v2 = vld [vmem:[%s394_s0 + $0xc8] sm:$0x1]  ;;  %18 = vperm.xlu0 %243, %v11_v1   ;;  %v56_v5 = vld [vmem:[%s394_s0 + $0xb0] sm:$0xff]  ;;  %v54_v7 = vld [vmem:[%s394_s0 + $0xa0] sm:$0xff]  ;;  %135 = vmatprep.mubr.f32.mxu0 %v257_v14  ;;  %v158_v21 = vsub.f32 1.0, %v11_v1  ;;  %vm29_vm3 = vcmask 785920  }
   0x3   :  { %230 = vmatprep.subr.msk.mxu0 %vm64_vm0, %v59_v2  ;;  %v55_v6 = vld [vmem:[%s394_s0 + $0xa8] sm:$0xff]  ;;  %v302_v8 = vld [vmem:[%s393_s1] sm:$0xff]  ;;  %v53_v9 = vld [vmem:[%s394_s0 + $0x98] sm:$0xff]  ;;  %vm31_vm4 = vcmask 794368   ;;  %v259_v38 = vmov 1.0   ;;  %vm60_vm5 = vcmask 793600  }
   0x4   :  { %231 = vmatpush1.msk.msra.mxu0 %vm64_vm0, %v58_v3  ;;  %14 = vst.msk [vmem:[#allocation2] sm:$0xff] %vm13_vm1, %v302_v8  ;;  %v52_v11 = vld [vmem:[%s394_s0 + $0x90] sm:$0xff]  ;;  %v51_v12 = vld [vmem:[%s394_s0 + $0x88] sm:$0xff]  ;;  %v50_v13 = vld [vmem:[%s394_s0 + $0x80] sm:$0xff]  ;;  %160 = vrot.lane.b32.xlu1 %v158_v21, %s258_s20  ;;  %v143_v45 = vand.u32 127, %v142_v44  ;;  %s262_s9 = smov 96  }
   0x5   :  { %79 = vmatprep.subr.mxu0 %v57_v4  ;;  %v49_v15 = vld [vmem:[%s394_s0 + $0x78] sm:$0xff]  ;;  %v48_v16 = vld [vmem:[%s394_s0 + $0x70] sm:$0xff]  ;;  %v47_v17 = vld [vmem:[%s394_s0 + $0x68] sm:$0xff]  ;;  %vm224_vm8 = vcmask 531968  }
   0x6   :  { %80 = vmatpush1.msra.mxu0 %v56_v5  ;;  %244 = vset.pattern.permute.xlu0 %v256_v10  ;;  %v46_v18 = vld [vmem:[%s394_s0 + $0x60] sm:$0xff]  ;;  %v45_v19 = vld [vmem:[%s394_s0 + $0x58] sm:$0xff]  ;;  %v44_v20 = vld [vmem:[%s394_s0 + $0x50] sm:$0xff]  ;;  %vm144_vm6 = vcmp.lt.s32.totalorder %v143_v45, 96 }
   0x7   :  { %81 = vmatprep.subr.mxu0 %v55_v6  ;;  %25 = vperm.xlu0 %244, %v11_v1   ;;  %v43_v22 = vld [vmem:[%s394_s0 + $0x48] sm:$0xff]  ;;  %v42_v23 = vld [vmem:[%s394_s0 + $0x40] sm:$0xff]  ;;  %v41_v24 = vld [vmem:[%s394_s0 + $0x38] sm:$0xff] }
   0x8   :  { %82 = vmatpush1.msra.mxu0 %v54_v7  ;;  %v40_v25 = vld [vmem:[%s394_s0 + $0x30] sm:$0xff]  ;;  %v39_v26 = vld [vmem:[%s394_s0 + $0x28] sm:$0xff]  ;;  %v38_v27 = vld [vmem:[%s394_s0 + $0x20] sm:$0xff]  ;;  %164 = vrot.lane.b32.xlu1 %v11_v1, %s258_s20 }
   0x9   :  { %83 = vmatprep.subr.mxu0 %v53_v9  ;;  %v37_v28 = vld [vmem:[%s394_s0 + $0x18] sm:$0xff]  ;;  %v36_v29 = vld [vmem:[%s394_s0 + $0x10] sm:$0xff]  ;;  %v35_v30 = vld [vmem:[%s394_s0 + $0x8] sm:$0xff] }
   0xa   :  { %84 = vmatpush1.msra.mxu0 %v52_v11  ;;  %v34_v31 = vld [vmem:[%s394_s0] sm:$0xff]  ;;  %s260_s0 = smov 64  }
   0xb   :  { %85 = vmatprep.subr.mxu0 %v51_v12  ;;  %245 = vset.pattern.permute.xlu0 %v255_v0 }
   0xc   :  { %86 = vmatpush1.msra.mxu0 %v50_v13 }
   0xd   :  { %87 = vmatprep.subr.mxu0 %v49_v15 }
   0xe   :  { %88 = vmatpush1.msra.mxu0 %v48_v16 }
   0xf   :  { %89 = vmatprep.subr.mxu0 %v47_v17 }
  0x10   :  { %90 = vmatpush1.msra.mxu0 %v46_v18 }
  0x11   :  { %91 = vmatprep.subr.mxu0 %v45_v19 }
  0x12   :  { %92 = vmatpush1.msra.mxu0 %v44_v20 }
  0x13   :  { %93 = vmatprep.subr.mxu0 %v43_v22 }
  0x14   :  { %94 = vmatpush1.msra.mxu0 %v42_v23 }
  0x15   :  { %95 = vmatprep.subr.mxu0 %v41_v24 }
  0x16   :  { %96 = vmatpush1.msra.mxu0 %v40_v25 }
  0x17   :  { %97 = vmatprep.subr.mxu0 %v39_v26 }
  0x18   :  { %98 = vmatpush1.msra.mxu0 %v38_v27 }
  0x19   :  { %99 = vmatprep.subr.mxu0 %v37_v28 }
  0x1a   :  { %100 = vmatpush1.msra.mxu0 %v36_v29 }
  0x1b   :  { %101 = vmatprep.subr.mxu0 %v35_v30 }
  0x1c   :  { %102 = vmatpush1.msra.mxu0 %v34_v31 }
  0x76   :  { %v161_v35 = vpop.permute.xlu1 %160 }
  0x77   :  { %v163_v37 = vmul.f32 %v161_v35, %v158_v21 }
  0x79   :  { %171 = vperm.xlu0 %245, %v163_v37  }
  0x7a   :  { %v165_v47 = vpop.permute.xlu1 %164 }
  0x7b   :  { %v167_v50 = vmul.f32 %v165_v47, %v158_v21 }
  0x7d   :  { %v367_v32 = vpop.permute.xlu0 %18 }
  0x7e   :  { %v21_v33 = vmul.f32 %v367_v32, %v302_v8 }
  0x80   :  { %23 = vst.msk [vmem:[#allocation2] sm:$0xff] %vm22_vm2, %v21_v33 }
  0x82   :  { %v26_v34 = vpop.permute.xlu0 %25 }
  0x83   :  { %v28_v36 = vmul.f32 %v26_v34, %v302_v8 }
  0x85   :  { %30 = vst.msk [vmem:[#allocation2] sm:$0xff] %vm29_vm3, %v28_v36 }
  0x86   :  { %32 = vst.msk [vmem:[#allocation2] sm:$0xff] %vm31_vm4, %v259_v38 }
  0x8d   :  { %v33_v39 = vld [vmem:[#allocation2] sm:$0xff] }
  0x8e   :  { %232 = vmatmul.mubr.msk.f32.vlgmr.msra.gmra.mxu0 %vm60_vm5, %v33_v39 }
  0xf4   :  { %v172_v51 = vpop.permute.xlu0 %171 }
  0xf5   :  { %v174_v52 = vmul.f32 %v172_v51, %v302_v8 }
 0x14e   :  { %v137_v40 = vpop.f32.mrf.mxu0 }
 0x14f   :  { %v233_v41 = vmul.f32 -1.442695, %v137_v40 }
 0x150   :  { %v139_v2 = vpop.f32.mrf.mxu0 }
 0x151   :  { %247 = vpow2.f32 %v233_v41  ;;  %vm211_vm7 = vcmp.gt.f32.partialorder %v139_v2, 0.0 }
 0x152   :  { %249 = vtanh.f32 %v137_v40  ;;  %v234_v4 = vsel %vm211_vm7, 1.0, %v257_v14 }
 0x15e   :  { %v248_v42 = vpop.eup %247 }
 0x15f   :  { %v148_v43 = vadd.f32 1.0, %v248_v42  ;;  %v250_v46 = vpop.eup %249 }
 0x161   :  { %251 = vrcp.f32 %v148_v43 }
 0x16e   :  { %v252_v48 = vpop.eup %251 }
 0x16f   :  { %v152_v49 = vsel %vm144_vm6, %v252_v48, %v250_v46 }
 0x170   :  { %154 = vrot.lane.b32.xlu1 %v152_v49, %s260_s0 }
 0x174   :  { %192 = vperm.xlu1 %246, %v167_v50  }
 0x178   :  { %181 = vrot.lane.b32.xlu1 %v302_v8, %s261_s8 }
 0x17c   :  { %176 = vrot.lane.b32.xlu1 %v174_v52, %s260_s0 }
 0x1e2   :  { %v155_v53 = vpop.permute.xlu1 %154 }
 0x1e3   :  { %v157_v54 = vmul.f32 %v155_v53, %v152_v49 }
 0x1e5   :  { %186 = vrot.lane.b32.xlu0 %v157_v54, %s262_s9  ;;  %v168_v62 = vmul.f32 %v157_v54, %v367_v32 }
 0x1ef   :  { %v193_v55 = vpop.permute.xlu1 %192 }
 0x1f3   :  { %v182_v56 = vpop.permute.xlu1 %181 }
 0x1f4   :  { %v184_v57 = vmul.f32 %v182_v56, %v152_v49 }
 0x1f7   :  { %v177_v61 = vpop.permute.xlu1 %176 }
 0x1f8   :  { %v179_v63 = vadd.f32 %v177_v61, %v168_v62 }
 0x257   :  { %v187_v58 = vpop.permute.xlu0 %186 }
 0x258   :  { %v189_v59 = vadd.f32 %v187_v58, %v184_v57 }
 0x25a   :  { %v195_v60 = vmul.f32 %v193_v55, %v189_v59 }
 0x25c   :  { %197 = vrot.lane.b32.xlu0 %v195_v60, %s261_s8 }
 0x2ce   :  { %v198_v0 = vpop.permute.xlu0 %197 }
 0x2cf   :  { %v200_v1 = vadd.f32 %v198_v0, %v179_v63 }
 0x2d1   :  { %253 = vtanh.f32 %v200_v1 }
 0x2de   :  { %v254_v3 = vpop.eup %253 }
 0x2df   :  { %203 = vrot.lane.b32.xlu1 %v254_v3, %s261_s8 }
 0x2e3   :  { %221 = vrot.lane.b32.xlu1 %v234_v4, %s260_s0 }
 0x351   :  { %v204_v5 = vpop.permute.xlu1 %203 }
 0x352   :  { %v206_v6 = vmul.f32 %v204_v5, %v152_v49 }
 0x354   :  { %v207_v7 = vmul.f32 %v206_v6, %v367_v32  ;;  %v209_v9 = vmul.f32 %v206_v6, %v193_v55 }
 0x355   :  { %v222_v12 = vpop.permute.xlu1 %221 }
 0x356   :  { %v208_v8 = vadd.f32 %v207_v7, %v174_v52 }
 0x358   :  { %v210_v10 = vadd.f32 %v209_v9, %v208_v8 }
 0x35a   :  { %215 = vrot.lane.b32.xlu0 %v210_v10, %s260_s0 }
 0x3cc   :  { %v216_v11 = vpop.permute.xlu0 %215 }
 0x3cd   :  { %218 = vst.msk [vmem:[%s395_s2] sm:$0xff] %vm13_vm1, %v216_v11 }
 0x3ce   :  { %219 = vst.msk [vmem:[%s395_s2] sm:$0xff] %vm22_vm2, %v200_v1 }
 0x3cf   :  { %225 = vst.msk [vmem:[%s395_s2] sm:$0xff] %vm224_vm8, %v222_v12 }

</bundles_post_ra>
